<compile_context>
chip_gen: v5e
topology: v5e:2x2
jax: 0.10.0
libtpu: 0.0.40
codegen_flags: <defaults>
</compile_context>

<pallas_src>
import jax
import jax.numpy as jnp
from jax.experimental import pallas as pl
from jax.experimental.pallas import tpu as pltpu

_LANE = 128
_SUBLANE = 8


def _round_up(x, m):
    return (x + m - 1) // m * m


def _output_cell_kernel(h_ref, mem_ref, w1h_ref, w1m_ref, b1_ref, alpha_ref,
                        w2_ref, b2_ref, out_ref):
    # First linear, concat fused into two MXU passes (bf16 operands, f32 acc):
    #   hidden = h @ W1_h + mem @ W1_m + b1
    hidden = (
        jnp.dot(h_ref[...], w1h_ref[...], preferred_element_type=jnp.float32)
        + jnp.dot(mem_ref[...], w1m_ref[...], preferred_element_type=jnp.float32)
        + b1_ref[...]
    )
    # PReLU in f32 (single learned alpha, broadcast from a (1, C_pad) row;
    # per-channel alpha works for free).
    hidden = jnp.where(hidden >= 0.0, hidden, alpha_ref[...] * hidden)
    # Second linear: bf16 operands, f32 acc, lane-dense (TB, 128) f32 store.
    out = (
        jnp.dot(hidden.astype(w2_ref.dtype), w2_ref[...],
                preferred_element_type=jnp.float32)
        + b2_ref[...]
    )
    out_ref[...] = out.astype(out_ref.dtype)


def prepare_output_cell_params(w1, b1, alpha, w2, b2):
    """One-time packing of PyTorch-layout parameters (run at init, not per call).

    w1: (C, 3*C)  b1: (C,)  alpha: () or (C,)  w2: (out_dim, C)  b2: (out_dim,)

    W1 is transposed to [in, out], split into the h-part (first 2C input rows)
    and mem-part (last C input rows), lane-padded on the output dim, and cast
    to bf16.  W2 likewise ([C_pad, OUT_pad], bf16).  Biases / alpha stay f32.
    Padded columns/rows are exactly zero, so padded lanes never contaminate
    real outputs.
    """
    C = w1.shape[0]
    K = w1.shape[1]
    assert K == 3 * C, (w1.shape,)
    OUT = w2.shape[0]
    assert w2.shape == (OUT, C), (w2.shape,)

    C_pad = _round_up(C, _LANE)
    OUT_pad = _round_up(OUT, _LANE)

    w1_t = jnp.asarray(w1, jnp.float32).T                 # (3C, C), [in, out]
    w1h = jnp.zeros((2 * C, C_pad), jnp.float32).at[:, :C].set(w1_t[: 2 * C])
    w1m = jnp.zeros((C, C_pad), jnp.float32).at[:, :C].set(w1_t[2 * C:])
    b1_row = jnp.zeros((1, C_pad), jnp.float32).at[0, :C].set(
        jnp.asarray(b1, jnp.float32))
    alpha_row = jnp.zeros((1, C_pad), jnp.float32).at[0, :C].set(
        jnp.broadcast_to(jnp.asarray(alpha, jnp.float32).reshape(-1), (C,)))
    w2_t = jnp.zeros((C_pad, OUT_pad), jnp.float32).at[:C, :OUT].set(
        jnp.asarray(w2, jnp.float32).T)
    b2_row = jnp.zeros((1, OUT_pad), jnp.float32).at[0, :OUT].set(
        jnp.asarray(b2, jnp.float32))

    return {
        "C": C, "OUT": OUT, "C_pad": C_pad, "OUT_pad": OUT_pad,
        "w1h": w1h.astype(jnp.bfloat16),
        "w1m": w1m.astype(jnp.bfloat16),
        "b1": b1_row,
        "alpha": alpha_row,
        "w2": w2_t.astype(jnp.bfloat16),
        "b2": b2_row,
    }


def _pick_batch_tile(B):
    """Batch tile: big tiles (overhead-dominated steps), >=2 steps for B>=256."""
    if B < 128:
        # Single padded grid step; this regime is launch/latency bound anyway
        # (a pure-XLA fallback is equally valid here).
        return _round_up(max(B, 1), _SUBLANE)
    if B < 256:
        return 128
    # >= 2 grid steps so both v7x TensorCores get work; cap tiles at 1024 rows.
    tb = min(1024, _round_up(B, 2 * _SUBLANE) // 2)
    return _round_up(tb, _SUBLANE)


def output_cell_forward(h, mem, params, *, return_padded=False):
    """Pallas forward of OutputCell.

    h: (B, 2*C), mem: (B, C), params: output of prepare_output_cell_params.
    Returns (B, out_dim) f32, or the padded (B_pad, OUT_pad) slab if
    return_padded=True (lets downstream consumers skip the slice).
    Jit this together with its consumer so the trailing slice fuses.
    """
    C, OUT = params["C"], params["OUT"]
    C_pad, OUT_pad = params["C_pad"], params["OUT_pad"]
    B = mem.shape[0]
    assert h.shape == (B, 2 * C), (h.shape, B, C)
    assert mem.shape == (B, C), (mem.shape, B, C)

    TB = _pick_batch_tile(B)
    B_pad = _round_up(B, TB)

    # bf16 matmul operands (f32 accumulation in-kernel). No K padding, no
    # concat: only pad the batch dim, and only when B is not a tile multiple.
    h_bf = jnp.asarray(h, jnp.bfloat16)
    mem_bf = jnp.asarray(mem, jnp.bfloat16)
    if B_pad != B:
        h_bf = jnp.pad(h_bf, ((0, B_pad - B), (0, 0)))
        mem_bf = jnp.pad(mem_bf, ((0, B_pad - B), (0, 0)))

    grid = (B_pad // TB,)
    flops = 2 * B_pad * (3 * C * C_pad + C_pad * OUT_pad)
    bytes_accessed = (
        2 * B_pad * 3 * C                          # h + mem (bf16)
        + 2 * (3 * C * C_pad + C_pad * OUT_pad)    # W1_h, W1_m, W2 (bf16)
        + 4 * (2 * C_pad + OUT_pad)                # b1, alpha, b2 (f32)
        + 4 * B_pad * OUT_pad                      # out (f32)
    )

    out_pad = pl.pallas_call(
        _output_cell_kernel,
        out_shape=jax.ShapeDtypeStruct((B_pad, OUT_pad), jnp.float32),
        grid_spec=pltpu.PrefetchScalarGridSpec(
            num_scalar_prefetch=0,
            grid=grid,
            in_specs=[
                pl.BlockSpec((TB, 2 * C), lambda i: (i, 0)),       # h tile
                pl.BlockSpec((TB, C), lambda i: (i, 0)),           # mem tile
                pl.BlockSpec((2 * C, C_pad), lambda i: (0, 0)),    # W1_h (resident)
                pl.BlockSpec((C, C_pad), lambda i: (0, 0)),        # W1_m (resident)
                pl.BlockSpec((1, C_pad), lambda i: (0, 0)),        # b1
                pl.BlockSpec((1, C_pad), lambda i: (0, 0)),        # alpha
                pl.BlockSpec((C_pad, OUT_pad), lambda i: (0, 0)),  # W2 (resident)
                pl.BlockSpec((1, OUT_pad), lambda i: (0, 0)),      # b2
            ],
            out_specs=pl.BlockSpec((TB, OUT_pad), lambda i: (i, 0)),
        ),
        compiler_params=pltpu.CompilerParams(
            dimension_semantics=("parallel",)),
        cost_estimate=pl.CostEstimate(
            flops=flops, transcendentals=0, bytes_accessed=bytes_accessed),
    )(h_bf, mem_bf, params["w1h"], params["w1m"], params["b1"],
      params["alpha"], params["w2"], params["b2"])

    if return_padded:
        return out_pad
    # Padded lanes/rows are exactly zero; slice fuses when this fn is jitted
    # together with its consumer.
    return out_pad[:B, :OUT]


def output_cell_reference(h, mem, w1, b1, alpha, w2, b2):
    """Pure-JAX f32 reference matching the PyTorch module exactly."""
    x = jnp.concatenate([h, mem], axis=1)
    y = x @ w1.T + b1
    y = jnp.where(y >= 0, y, alpha * y)
    return y @ w2.T + b2


def output_cell_reference_bf16(h, mem, w1, b1, alpha, w2, b2):
    """Reference with the same bf16-operand / f32-accumulation recipe as the kernel."""
    x = jnp.concatenate([h, mem], axis=1).astype(jnp.bfloat16)
    y = jnp.dot(x, jnp.asarray(w1, jnp.float32).T.astype(jnp.bfloat16),
                preferred_element_type=jnp.float32) + b1
    y = jnp.where(y >= 0, y, alpha * y)
    return jnp.dot(y.astype(jnp.bfloat16),
                   jnp.asarray(w2, jnp.float32).T.astype(jnp.bfloat16),
                   preferred_element_type=jnp.float32) + b2


if __name__ == "__main__":
    C = 32          # ctrl_dim
    OUT = 28        # out_dim (module default)

    key = jax.random.PRNGKey(0)
    kh, km, kw1, kb1, kw2, kb2, kh2, km2 = jax.random.split(key, 8)

    # Parameters (nn.Linear / nn.PReLU shapes), packed once.
    w1 = jax.random.normal(kw1, (C, 3 * C), dtype=jnp.float32) * 0.1
    b1 = jax.random.normal(kb1, (C,), dtype=jnp.float32) * 0.1
    alpha = jnp.float32(0.25)   # PyTorch PReLU default init
    w2 = jax.random.normal(kw2, (OUT, C), dtype=jnp.float32) * 0.1
    b2 = jax.random.normal(kb2, (OUT,), dtype=jnp.float32) * 0.1
    params = prepare_output_cell_params(w1, b1, alpha, w2, b2)

    # Jit the whole forward so the trailing [:B, :OUT] slice fuses with the
    # kernel output instead of being a separate HBM pass.
    fwd = jax.jit(lambda hh, mm: output_cell_forward(hh, mm, params))

    # Small batch (single padded grid step; latency-bound regime).
    B = 8
    h = jax.random.normal(kh, (B, 2 * C), dtype=jnp.float32)
    mem = jax.random.normal(km, (B, C), dtype=jnp.float32)
    out = jax.block_until_ready(fwd(h, mem))
    ref = output_cell_reference(h, mem, w1, b1, alpha, w2, b2)
    ref_bf16 = output_cell_reference_bf16(h, mem, w1, b1, alpha, w2, b2)
    assert out.shape == (B, OUT), out.shape
    assert jnp.allclose(out, ref_bf16, atol=5e-3, rtol=5e-3), "small-batch mismatch (bf16 ref)"
    assert jnp.allclose(out, ref, atol=6e-2, rtol=6e-2), "small-batch mismatch (f32 ref)"

    # Larger batch exercising the multi-step "parallel" batch grid (TB=128, grid=(2,)).
    B2 = 256
    h2 = jax.random.normal(kh2, (B2, 2 * C), dtype=jnp.float32)
    mem2 = jax.random.normal(km2, (B2, C), dtype=jnp.float32)
    out2 = jax.block_until_ready(fwd(h2, mem2))
    ref2 = output_cell_reference(h2, mem2, w1, b1, alpha, w2, b2)
    ref2_bf16 = output_cell_reference_bf16(h2, mem2, w1, b1, alpha, w2, b2)
    assert out2.shape == (B2, OUT), out2.shape
    assert jnp.allclose(out2, ref2_bf16, atol=5e-3, rtol=5e-3), "batched mismatch (bf16 ref)"
    assert jnp.allclose(out2, ref2, atol=6e-2, rtol=6e-2), "batched mismatch (f32 ref)"

    print("KERNEL_OK")
</pallas_src>

<mosaic_0001>
module attributes {stable_mosaic.version = 11 : i64} {
  func.func @_output_cell_kernel(%arg0: i32, %arg1: memref<8x64xbf16, #tpu.memory_space<vmem>>, %arg2: memref<8x32xbf16, #tpu.memory_space<vmem>>, %arg3: memref<64x128xbf16, #tpu.memory_space<vmem>>, %arg4: memref<32x128xbf16, #tpu.memory_space<vmem>>, %arg5: memref<1x128xf32, #tpu.memory_space<vmem>>, %arg6: memref<1x128xf32, #tpu.memory_space<vmem>>, %arg7: memref<128x128xbf16, #tpu.memory_space<vmem>>, %arg8: memref<1x128xf32, #tpu.memory_space<vmem>>, %arg9: memref<8x128xf32, #tpu.memory_space<vmem>>) attributes {dimension_semantics = [#tpu.dimension_semantics<parallel>], iteration_bounds = array<i64: 1>, scalar_prefetch = 0 : i64, scratch_operands = 0 : i64, tpu.core_type = #tpu.core_type<tc>, window_params = [{transform_indices = @transform_0, window_bounds = array<i64: 8, 64>}, {transform_indices = @transform_1, window_bounds = array<i64: 8, 32>}, {pipeline_mode = #tpu.pipeline_mode<synchronous>, transform_indices = @transform_2, window_bounds = array<i64: 64, 128>}, {pipeline_mode = #tpu.pipeline_mode<synchronous>, transform_indices = @transform_3, window_bounds = array<i64: 32, 128>}, {pipeline_mode = #tpu.pipeline_mode<synchronous>, transform_indices = @transform_4, window_bounds = array<i64: 1, 128>}, {pipeline_mode = #tpu.pipeline_mode<synchronous>, transform_indices = @transform_5, window_bounds = array<i64: 1, 128>}, {pipeline_mode = #tpu.pipeline_mode<synchronous>, transform_indices = @transform_6, window_bounds = array<i64: 128, 128>}, {pipeline_mode = #tpu.pipeline_mode<synchronous>, transform_indices = @transform_7, window_bounds = array<i64: 1, 128>}, {transform_indices = @transform_8, window_bounds = array<i64: 8, 128>}]} {
    %c0 = arith.constant 0 : index
    %c0_0 = arith.constant 0 : index
    %0 = vector.load %arg1[%c0, %c0_0] : memref<8x64xbf16, #tpu.memory_space<vmem>>, vector<8x64xbf16>
    %c0_1 = arith.constant 0 : index
    %c0_2 = arith.constant 0 : index
    %1 = vector.load %arg3[%c0_1, %c0_2] : memref<64x128xbf16, #tpu.memory_space<vmem>>, vector<64x128xbf16>
    %cst = arith.constant dense<0.000000e+00> : vector<8x128xf32>
    %2 = tpu.matmul %0, %1, %cst {dimension_numbers = #tpu.dot_dimension_numbers<[1], [0], [0], [1], [0, 0, 1, 1], [], []>} : vector<8x64xbf16>, vector<64x128xbf16>, vector<8x128xf32> -> vector<8x128xf32>
    %c0_3 = arith.constant 0 : index
    %c0_4 = arith.constant 0 : index
    %3 = vector.load %arg2[%c0_3, %c0_4] : memref<8x32xbf16, #tpu.memory_space<vmem>>, vector<8x32xbf16>
    %c0_5 = arith.constant 0 : index
    %c0_6 = arith.constant 0 : index
    %4 = vector.load %arg4[%c0_5, %c0_6] : memref<32x128xbf16, #tpu.memory_space<vmem>>, vector<32x128xbf16>
    %cst_7 = arith.constant dense<0.000000e+00> : vector<8x128xf32>
    %5 = tpu.matmul %3, %4, %cst_7 {dimension_numbers = #tpu.dot_dimension_numbers<[1], [0], [0], [1], [0, 0, 1, 1], [], []>} : vector<8x32xbf16>, vector<32x128xbf16>, vector<8x128xf32> -> vector<8x128xf32>
    %6 = arith.addf %2, %5 : vector<8x128xf32>
    %c0_8 = arith.constant 0 : index
    %c0_9 = arith.constant 0 : index
    %7 = vector.load %arg5[%c0_8, %c0_9] : memref<1x128xf32, #tpu.memory_space<vmem>>, vector<1x128xf32>
    %8 = vector.broadcast %7 : vector<1x128xf32> to vector<8x128xf32>
    %9 = arith.addf %6, %8 : vector<8x128xf32>
    %cst_10 = arith.constant 0.000000e+00 : f32
    %10 = vector.broadcast %cst_10 : f32 to vector<8x128xf32>
    %11 = arith.cmpf oge, %9, %10 : vector<8x128xf32>
    %c0_11 = arith.constant 0 : index
    %c0_12 = arith.constant 0 : index
    %12 = vector.load %arg6[%c0_11, %c0_12] : memref<1x128xf32, #tpu.memory_space<vmem>>, vector<1x128xf32>
    %13 = vector.broadcast %12 : vector<1x128xf32> to vector<8x128xf32>
    %14 = arith.mulf %13, %9 : vector<8x128xf32>
    %15 = arith.select %11, %9, %14 : vector<8x128xi1>, vector<8x128xf32>
    %16 = arith.truncf %15 : vector<8x128xf32> to vector<8x128xbf16>
    %c0_13 = arith.constant 0 : index
    %c0_14 = arith.constant 0 : index
    %17 = vector.load %arg7[%c0_13, %c0_14] : memref<128x128xbf16, #tpu.memory_space<vmem>>, vector<128x128xbf16>
    %cst_15 = arith.constant dense<0.000000e+00> : vector<8x128xf32>
    %18 = tpu.matmul %16, %17, %cst_15 {dimension_numbers = #tpu.dot_dimension_numbers<[1], [0], [0], [1], [0, 0, 1, 1], [], []>} : vector<8x128xbf16>, vector<128x128xbf16>, vector<8x128xf32> -> vector<8x128xf32>
    %c0_16 = arith.constant 0 : index
    %c0_17 = arith.constant 0 : index
    %19 = vector.load %arg8[%c0_16, %c0_17] : memref<1x128xf32, #tpu.memory_space<vmem>>, vector<1x128xf32>
    %20 = vector.broadcast %19 : vector<1x128xf32> to vector<8x128xf32>
    %21 = arith.addf %18, %20 : vector<8x128xf32>
    %c0_18 = arith.constant 0 : index
    %c0_19 = arith.constant 0 : index
    %22 = vector.load %arg9[%c0_18, %c0_19] : memref<8x128xf32, #tpu.memory_space<vmem>>, vector<8x128xf32>
    tpu.vector_store %arg9[%c0_18, %c0_19], %21 {strides = array<i32>} : memref<8x128xf32, #tpu.memory_space<vmem>>, vector<8x128xf32>,
    return
  }
  func.func @transform_0(%arg0: i32) -> (i32, i32) {
    %c0_i32 = arith.constant 0 : i32
    %c0_i32_0 = arith.constant 0 : i32
    return %arg0, %c0_i32 : i32, i32
  }
  func.func @transform_1(%arg0: i32) -> (i32, i32) {
    %c0_i32 = arith.constant 0 : i32
    %c0_i32_0 = arith.constant 0 : i32
    return %arg0, %c0_i32 : i32, i32
  }
  func.func @transform_2(%arg0: i32) -> (i32, i32) {
    %c0_i32 = arith.constant 0 : i32
    %c0_i32_0 = arith.constant 0 : i32
    %c0_i32_1 = arith.constant 0 : i32
    return %c0_i32, %c0_i32_0 : i32, i32
  }
  func.func @transform_3(%arg0: i32) -> (i32, i32) {
    %c0_i32 = arith.constant 0 : i32
    %c0_i32_0 = arith.constant 0 : i32
    %c0_i32_1 = arith.constant 0 : i32
    return %c0_i32, %c0_i32_0 : i32, i32
  }
  func.func @transform_4(%arg0: i32) -> (i32, i32) {
    %c0_i32 = arith.constant 0 : i32
    %c0_i32_0 = arith.constant 0 : i32
    %c0_i32_1 = arith.constant 0 : i32
    return %c0_i32, %c0_i32_0 : i32, i32
  }
  func.func @transform_5(%arg0: i32) -> (i32, i32) {
    %c0_i32 = arith.constant 0 : i32
    %c0_i32_0 = arith.constant 0 : i32
    %c0_i32_1 = arith.constant 0 : i32
    return %c0_i32, %c0_i32_0 : i32, i32
  }
  func.func @transform_6(%arg0: i32) -> (i32, i32) {
    %c0_i32 = arith.constant 0 : i32
    %c0_i32_0 = arith.constant 0 : i32
    %c0_i32_1 = arith.constant 0 : i32
    return %c0_i32, %c0_i32_0 : i32, i32
  }
  func.func @transform_7(%arg0: i32) -> (i32, i32) {
    %c0_i32 = arith.constant 0 : i32
    %c0_i32_0 = arith.constant 0 : i32
    %c0_i32_1 = arith.constant 0 : i32
    return %c0_i32, %c0_i32_0 : i32, i32
  }
  func.func @transform_8(%arg0: i32) -> (i32, i32) {
    %c0_i32 = arith.constant 0 : i32
    %c0_i32_0 = arith.constant 0 : i32
    return %arg0, %c0_i32 : i32, i32
  }
}

</mosaic_0001>

<bundles_post_ra>
// kernel: _lambda_.1
= control target key start
LH: loop header
LB: loop body
LE: loop exit
PB: predicated region body
PF: predicated region fallthrough
CT: control target
= control target key end

     0   :  { %13 = vsyncpa [#allocation3], 0  ;;  %s498_s0 = inlined_call_operand.vmem [shape: bf16[8,64], index: 0, kind: input, shape index: {}]   ;;  %s499_s1 = inlined_call_operand.vmem [shape: bf16[8,32], index: 1, kind: input, shape index: {}]   ;;  %s500_s2 = inlined_call_operand.hbm [shape: bf16[64,128], index: 2, kind: input, shape index: {}]   ;;  %s501_s3 = inlined_call_operand.vmem [shape: bf16[32,128], index: 3, kind: input, shape index: {}]   ;;  %s502_s4 = inlined_call_operand.vmem [shape: f32[1,128], index: 4, kind: input, shape index: {}]   ;;  %s503_s5 = inlined_call_operand.vmem [shape: f32[1,128], index: 5, kind: input, shape index: {}]   ;;  %s504_s6 = inlined_call_operand.hbm [shape: bf16[128,128], index: 6, kind: input, shape index: {}]   ;;  %s505_s7 = inlined_call_operand.vmem [shape: f32[1,128], index: 7, kind: input, shape index: {}]   ;;  %s506_s8 = inlined_call_operand.hbm [shape: f32[8,128], index: 8, kind: output, shape index: {}]  }
   0x1   :  { %14 = vsyncpa [#allocation6], 0 }
   0x2   :  { %15 = vsyncpa [#allocation4], 0  ;;  %s24_s29 = sshll.u32 %s500_s2, 4  ;;  %s418_s30 = smov [#allocation2]   ;;  %s25_s29 = int_to_ptr.hbm [resolvable:$true] %s24_s29 }
   0x3   :  { %s26_s9 = sshll.u32 %s418_s30, 4  ;;  %s43_s12 = sshll.u32 %s504_s6, 4  ;;  %s27_s9 = int_to_ptr.vmem [resolvable:$true] %s26_s9  ;;  %s44_s12 = int_to_ptr.hbm [resolvable:$true] %s43_s12 }
   0x4   :  { %s419_s13 = smov 64   ;;  %s420_s14 = smov 4  }
   0x5   :  { %32 = dma.hbm_to_vmem [thread:$0]  %s25_s29, 512, %s27_s9, [#allocation3], %s419_s13, %s419_s13, %s420_s14  }
   0x6   :  { %s421_s15 = smov [#allocation5]  }
   0x7   :  { %s45_s16 = sshll.u32 %s421_s15, 4  ;;  %s46_s16 = int_to_ptr.vmem [resolvable:$true] %s45_s16 }
   0x8   :  { %51 = dma.hbm_to_vmem [thread:$0]  %s44_s12, 1024, %s46_s16, [#allocation6], %s419_s13, %s419_s13, %s420_s14  }
   0x9   :  { %412 = dma.done.wait [#allocation3], 512  }
   0xa   :  { %413 = vsyncadd [#allocation3], 4294966784 }
   0xb   :  { %414 = dma.done.wait [#allocation6], 1024  }
   0xc   :  { %415 = vsyncadd [#allocation6], 4294966272  ;;  %v323_v0 = vld [vmem:[%s501_s3 + $0x8] sm:$0xff]  ;;  %v321_v1 = vld [vmem:[#allocation2 + $0x18] sm:$0xff]  ;;  %vm89_vm0 = vcmask 261120   ;;  %vm130_vm1 = vcmask 523264  }
   0xd   :  { %99 = vmatpush.bf16.msra.mxu0 %v323_v0  ;;  %138 = vmatpush.bf16.msra.mxu1 %v321_v1  ;;  %v322_v2 = vld [vmem:[%s501_s3] sm:$0xff]  ;;  %v320_v3 = vld [vmem:[#allocation2 + $0x10] sm:$0xff]  ;;  %v331_v4 = vld [vmem:[#allocation5 + $0x38] sm:$0xff]  ;;  %s422_s26 = smov [#allocation7]   ;;  %s249_s29 = sshll.u32 %s506_s8, 4  ;;  %s250_s29 = int_to_ptr.hbm [resolvable:$true] %s249_s29 }
   0xe   :  { %v330_v5 = vld [vmem:[#allocation5 + $0x30] sm:$0xff]  ;;  %228 = vmatpush.bf16.msra.mxu2 %v331_v4  ;;  %v72_v6 = vld [vmem:[%s499_s1] sm:$0xf]  ;;  %v319_v7 = vld [vmem:[#allocation2 + $0x8] sm:$0xff] }
   0xf   :  { %v329_v8 = vld [vmem:[#allocation5 + $0x28] sm:$0xff]  ;;  %v318_v9 = vld [vmem:[#allocation2] sm:$0xff]  ;;  %v327_v12 = vld [vmem:[#allocation5 + $0x18] sm:$0xff] }
  0x10   :  { %v328_v10 = vld [vmem:[#allocation5 + $0x20] sm:$0xff]  ;;  %v326_v13 = vld [vmem:[#allocation5 + $0x10] sm:$0xff]  ;;  %v325_v14 = vld [vmem:[#allocation5 + $0x8] sm:$0xff] }
  0x11   :  { %100 = vmatpush.bf16.msra.mxu0 %v322_v2  ;;  %139 = vmatpush.bf16.msra.mxu1 %v320_v3  ;;  %v63_v11 = vld [vmem:[%s498_s0] sm:$0xf] }
  0x12   :  { %229 = vmatpush.bf16.msra.mxu2 %v330_v5  ;;  %v324_v15 = vld [vmem:[#allocation5] sm:$0xff] }
  0x13   :  { %v337_v17 = vld [vmem:[%s502_s4] ss:$0 sm:$0xff]  ;;  %s247_s4 = sshll.u32 %s422_s26, 4  ;;  %s248_s4 = int_to_ptr.vmem [resolvable:$true] %s247_s4 }
  0x14   :  { %268 = vmatmul.msk.bf16.vlgmr.msra.gmra.mxu0 %vm89_vm0, %v72_v6  ;;  %v338_v21 = vld [vmem:[%s503_s5] ss:$0 sm:$0xff] }
  0x15   :  { %140 = vmatpush.bf16.msra.mxu1 %v319_v7  ;;  %v339_v27 = vld [vmem:[%s505_s7] ss:$0 sm:$0xff] }
  0x16   :  { %230 = vmatpush.bf16.msra.mxu2 %v329_v8 }
  0x19   :  { %141 = vmatpush.bf16.msra.mxu1 %v318_v9 }
  0x1a   :  { %231 = vmatpush.bf16.msra.mxu2 %v328_v10 }
  0x1c   :  { %285 = vmatmul.msk.bf16.vlgmr.msra.gmra.mxu1 %vm130_vm1, %v63_v11 }
  0x1e   :  { %232 = vmatpush.bf16.msra.mxu2 %v327_v12 }
  0x22   :  { %233 = vmatpush.bf16.msra.mxu2 %v326_v13 }
  0x26   :  { %234 = vmatpush.bf16.msra.mxu2 %v325_v14 }
  0x2a   :  { %235 = vmatpush.bf16.msra.mxu2 %v324_v15 }
  0x91   :  { %v102_v16 = vpop.f32.mrf.mxu0 }
  0x99   :  { %v104_v18 = vpop.f32.mrf.mxu0  ;;  %v143_v19 = vpop.f32.mrf.mxu1 }
  0x9a   :  { %v144_v20 = vadd.f32 %v143_v19, %v102_v16 }
  0x9c   :  { %v151_v22 = vadd.f32 %v337_v17, %v144_v20 }
  0x9e   :  { %vm152_vm2 = vcmp.ge.f32.partialorder %v151_v22, 0.0  ;;  %v157_v23 = vmul.f32 %v338_v21, %v151_v22 }
  0xa0   :  { %v158_v24 = vsel %vm152_vm2, %v151_v22, %v157_v23 }
  0xa1   :  { %v145_v25 = vpop.f32.mrf.mxu1  ;;  %v159_v26 = vpack.c.bf16 %v158_v24, %v158_v24 }
  0xa3   :  { %236 = vmatmul.bf16.vlgmr.msra.gmra.mxu2 %v159_v26 }
 0x126   :  { %v237_v28 = vpop.f32.mrf.mxu2 }
 0x127   :  { %v238_v29 = vadd.f32 %v339_v27, %v237_v28 }
 0x129   :  { %241 = vst [vmem:[#allocation7] sm:$0xff] %v238_v29 }
 0x12a   :  { %252 = dma.vmem_to_hbm [thread:$0]  %s248_s4, 128, %s250_s29, [#allocation4]  }
 0x12e   :  { %v239_v30 = vpop.f32.mrf.mxu2 }
 0x12f   :  { %416 = dma.done.wait [#allocation4], 128  }
 0x130   :  { %417 = vsyncadd [#allocation4], 4294967168 }
 0x131   :  { %257 = vsyncpa [#allocation3], 1 }
 0x132   :  { %258 = vsyncpa [#allocation6], 1 }
 0x133   :  { %259 = vsyncpa [#allocation4], 1 }

</bundles_post_ra>
